<compile_context>
chip_gen: v6e
topology: v6e:2x2x1
jax: 0.10.0
libtpu: 0.0.40
codegen_flags: <defaults>
</compile_context>

<pallas_src>
import jax
import jax.numpy as jnp
from jax.experimental import pallas as pl
from jax.experimental.pallas import tpu as pltpu


_LANE = 128
_SUBLANE = 8
# ~2 MiB blocks: on the HBM roofline for copy kernels, and small enough that
# double-buffered in+out blocks fit the default scoped VMEM on v5e/v6e/v7x.
_TARGET_BLOCK_BYTES = 2 << 20


def _fused_flatten_kernel(head_ref, err_ref, head_out_ref, err_out_ref):
    """Identity copies: head (single resident block) + one errors row tile."""
    i = pl.program_id(0)

    # Head block index is constant across the grid -> the output block stays
    # resident in VMEM and is written back to HBM once after the last step.
    @pl.when(i == 0)
    def _():
        head_out_ref[...] = head_ref[...]

    # Errors: lane-dense (tr, flat_dim) tile for this grid step.
    err_out_ref[...] = err_ref[...]


def _flat2d(x: jax.Array):
    """Metadata-only row-major flatten to (rows, prod(rest)) == torch .view."""
    rows = x.shape[0]
    d = 1
    for s in x.shape[1:]:
        d *= s
    return jnp.reshape(x, (rows, d)), d


def _lane_dense_fold(x2: jax.Array):
    """If x2 has fewer than 8 rows, refold (metadata only) into a fully
    sublane/lane-dense (8, total//8) slab when possible. Returns
    (folded_array, original_2d_shape_to_unfold_to)."""
    rows, d = x2.shape
    total = rows * d
    if rows < _SUBLANE and total % (_SUBLANE * _LANE) == 0:
        return jnp.reshape(x2, (_SUBLANE, total // _SUBLANE)), (rows, d)
    return x2, (rows, d)


def _pick_row_tile(rows: int, d: int, itemsize: int) -> int:
    """Largest multiple-of-8 row tile with block bytes ~= _TARGET_BLOCK_BYTES."""
    tr = max(1, _TARGET_BLOCK_BYTES // max(1, d * itemsize))
    tr = max(_SUBLANE, (tr // _SUBLANE) * _SUBLANE)
    return rows if tr >= rows else tr


def relaxed_flatten(curr_head: jax.Array, curr_errors: jax.Array):
    """Pallas-backed equivalent of RelaxedFlatten.forward."""
    head2, _ = _flat2d(curr_head)
    err2, d_e = _flat2d(curr_errors)
    E = err2.shape[0]

    # Fold the tiny head into a lane/sublane-dense slab (metadata only).
    head_slab, head_unfold = _lane_dense_fold(head2)
    hr, hd = head_slab.shape

    tr = _pick_row_tile(E, d_e, err2.dtype.itemsize)
    grid = (pl.cdiv(E, tr),)

    head_out, err_out = pl.pallas_call(
        _fused_flatten_kernel,
        out_shape=(
            jax.ShapeDtypeStruct((hr, hd), head_slab.dtype),
            jax.ShapeDtypeStruct((E, d_e), err2.dtype),
        ),
        grid=grid,
        in_specs=[
            # Head: whole array as one block, constant index -> fetched once.
            pl.BlockSpec((hr, hd), lambda i: (0, 0)),
            # Errors: ~2 MiB lane-dense row tiles (full flat_dim on lanes).
            pl.BlockSpec((tr, d_e), lambda i: (i, 0)),
        ],
        out_specs=(
            pl.BlockSpec((hr, hd), lambda i: (0, 0)),
            pl.BlockSpec((tr, d_e), lambda i: (i, 0)),
        ),
        # Identity op: alias inputs to outputs so no second HBM buffer is
        # allocated/filled when XLA can honor the alias.
        input_output_aliases={0: 0, 1: 1},
        compiler_params=pltpu.CompilerParams(
            # "arbitrary": head output block index is constant over this axis,
            # so it must not be sharded across megacore TensorCores.
            dimension_semantics=("arbitrary",),
        ),
    )(head_slab, err2)

    head_out = jnp.reshape(head_out, head_unfold)
    return head_out, err_out


if __name__ == "__main__":
    key = jax.random.PRNGKey(0)
    k_head, k_err = jax.random.split(key)

    B, C, H, W = 2, 4, 16, 16   # curr_head: NCHW
    E = 8                       # number of zonotope error terms

    curr_head = jax.random.normal(k_head, (B, C, H, W), dtype=jnp.float32)
    curr_errors = jax.random.normal(k_err, (E, C, H, W), dtype=jnp.float32)

    fn = jax.jit(relaxed_flatten)
    out_head, out_errors = fn(curr_head, curr_errors)
    out_head = jax.block_until_ready(out_head)
    out_errors = jax.block_until_ready(out_errors)

    # Reference: plain row-major reshape (== torch .view semantics).
    ref_head = jnp.reshape(curr_head, (B, -1))
    ref_errors = jnp.reshape(curr_errors, (E, -1))
    assert out_head.shape == (B, C * H * W)
    assert out_errors.shape == (E, C * H * W)
    assert jnp.array_equal(out_head, ref_head)
    assert jnp.array_equal(out_errors, ref_errors)

    print("KERNEL_OK")
</pallas_src>

<mosaic_0001>
module attributes {stable_mosaic.version = 11 : i64} {
  func.func @_fused_flatten_kernel(%arg0: i32, %arg1: memref<8x256xf32, #tpu.memory_space<vmem>>, %arg2: memref<8x1024xf32, #tpu.memory_space<vmem>>, %arg3: memref<8x256xf32, #tpu.memory_space<vmem>>, %arg4: memref<8x1024xf32, #tpu.memory_space<vmem>>) attributes {dimension_semantics = [#tpu.dimension_semantics<arbitrary>], iteration_bounds = array<i64: 1>, scalar_prefetch = 0 : i64, scratch_operands = 0 : i64, tpu.core_type = #tpu.core_type<tc>, window_params = [{pipeline_mode = #tpu.pipeline_mode<synchronous>, transform_indices = @transform_0, window_bounds = array<i64: 8, 256>}, {transform_indices = @transform_1, window_bounds = array<i64: 8, 1024>}, {pipeline_mode = #tpu.pipeline_mode<synchronous>, transform_indices = @transform_2, window_bounds = array<i64: 8, 256>}, {transform_indices = @transform_3, window_bounds = array<i64: 8, 1024>}]} {
    %c0_i32 = arith.constant 0 : i32
    %0 = arith.cmpi eq, %arg0, %c0_i32 : i32
    %1 = arith.extui %0 : i1 to i32
    %c0_i32_0 = arith.constant 0 : i32
    %2 = arith.cmpi ne, %1, %c0_i32_0 : i32
    scf.if %2 {
      %c0_4 = arith.constant 0 : index
      %c0_5 = arith.constant 0 : index
      %5 = vector.load %arg1[%c0_4, %c0_5] : memref<8x256xf32, #tpu.memory_space<vmem>>, vector<8x256xf32>
      %c0_6 = arith.constant 0 : index
      %c0_7 = arith.constant 0 : index
      %6 = vector.load %arg3[%c0_6, %c0_7] : memref<8x256xf32, #tpu.memory_space<vmem>>, vector<8x256xf32>
      tpu.vector_store %arg3[%c0_6, %c0_7], %5 {strides = array<i32>} : memref<8x256xf32, #tpu.memory_space<vmem>>, vector<8x256xf32>,
    } else {
    }
    %c0 = arith.constant 0 : index
    %c0_1 = arith.constant 0 : index
    %3 = vector.load %arg2[%c0, %c0_1] : memref<8x1024xf32, #tpu.memory_space<vmem>>, vector<8x1024xf32>
    %c0_2 = arith.constant 0 : index
    %c0_3 = arith.constant 0 : index
    %4 = vector.load %arg4[%c0_2, %c0_3] : memref<8x1024xf32, #tpu.memory_space<vmem>>, vector<8x1024xf32>
    tpu.vector_store %arg4[%c0_2, %c0_3], %3 {strides = array<i32>} : memref<8x1024xf32, #tpu.memory_space<vmem>>, vector<8x1024xf32>,
    return
  }
  func.func @transform_0(%arg0: i32) -> (i32, i32) {
    %c0_i32 = arith.constant 0 : i32
    %c0_i32_0 = arith.constant 0 : i32
    %c0_i32_1 = arith.constant 0 : i32
    return %c0_i32, %c0_i32_0 : i32, i32
  }
  func.func @transform_1(%arg0: i32) -> (i32, i32) {
    %c0_i32 = arith.constant 0 : i32
    %c0_i32_0 = arith.constant 0 : i32
    return %arg0, %c0_i32 : i32, i32
  }
  func.func @transform_2(%arg0: i32) -> (i32, i32) {
    %c0_i32 = arith.constant 0 : i32
    %c0_i32_0 = arith.constant 0 : i32
    %c0_i32_1 = arith.constant 0 : i32
    return %c0_i32, %c0_i32_0 : i32, i32
  }
  func.func @transform_3(%arg0: i32) -> (i32, i32) {
    %c0_i32 = arith.constant 0 : i32
    %c0_i32_0 = arith.constant 0 : i32
    return %arg0, %c0_i32 : i32, i32
  }
}

</mosaic_0001>

<bundles_post_ra>
// kernel: relaxed_flatten.1
= control target key start
LH: loop header
LB: loop body
LE: loop exit
PB: predicated region body
PF: predicated region fallthrough
CT: control target
= control target key end

     0   :  { %s125_s0 = inlined_call_operand.vmem [shape: f32[8,256], index: 0, kind: input, shape index: {}, may-alias: {0,2}]   ;;  %s126_s2 = inlined_call_operand.vmem [shape: f32[8,256], index: 2, kind: output, shape index: {0}, may-alias: {0,2}]   ;;  %s127_s1 = inlined_call_operand.vmem [shape: f32[8,1024], index: 1, kind: input, shape index: {}, may-alias: {1,3}]   ;;  %s128_s3 = inlined_call_operand.vmem [shape: f32[8,1024], index: 3, kind: output, shape index: {1}, may-alias: {1,3}]  }
   0x1   :  { %v17_v0 = vld [vmem:[%s125_s0] sm:$0xff]  ;;  %v18_v1 = vld [vmem:[%s125_s0 + $0x8] sm:$0xff] }
   0x2   :  { %v21_v2 = vld [vmem:[%s127_s1] sm:$0xff]  ;;  %19 = vst [vmem:[%s126_s2] sm:$0xff] %v17_v0  ;;  %20 = vst [vmem:[%s126_s2 + $0x8] sm:$0xff] %v18_v1 }
   0x3   :  { %29 = vst [vmem:[%s128_s3] sm:$0xff] %v21_v2 }
   0xa   :  { %v22_v3 = vld [vmem:[%s127_s1 + $0x8] sm:$0xff]  ;;  %v23_v4 = vld [vmem:[%s127_s1 + $0x10] sm:$0xff]  ;;  %v24_v5 = vld [vmem:[%s127_s1 + $0x18] sm:$0xff] }
   0xb   :  { %30 = vst [vmem:[%s128_s3 + $0x8] sm:$0xff] %v22_v3  ;;  %31 = vst [vmem:[%s128_s3 + $0x10] sm:$0xff] %v23_v4 }
   0xc   :  { %32 = vst [vmem:[%s128_s3 + $0x18] sm:$0xff] %v24_v5 }
  0x13   :  { %v25_v6 = vld [vmem:[%s127_s1 + $0x20] sm:$0xff]  ;;  %v26_v7 = vld [vmem:[%s127_s1 + $0x28] sm:$0xff]  ;;  %v27_v8 = vld [vmem:[%s127_s1 + $0x30] sm:$0xff] }
  0x14   :  { %33 = vst [vmem:[%s128_s3 + $0x20] sm:$0xff] %v25_v6  ;;  %34 = vst [vmem:[%s128_s3 + $0x28] sm:$0xff] %v26_v7 }
  0x15   :  { %35 = vst [vmem:[%s128_s3 + $0x30] sm:$0xff] %v27_v8 }
  0x1c   :  { %v28_v9 = vld [vmem:[%s127_s1 + $0x38] sm:$0xff] }
  0x1d   :  { %36 = vst [vmem:[%s128_s3 + $0x38] sm:$0xff] %v28_v9 }

</bundles_post_ra>
